<compile_context>
chip_gen: v5e
topology: v5e:2x2
jax: 0.10.0
libtpu: 0.0.40
codegen_flags: <defaults>
</compile_context>

<pallas_src>
import jax
import jax.numpy as jnp
from jax import lax
from jax.experimental import pallas as pl
from jax.experimental.pallas import tpu as pltpu


def _falcon_rank_kernel(x_ref, w_ref, b_ref, o_ref):
    """One grid step == one batch image.

    x_ref : (1, H, W*Cin)        input image, lane order (w, i)
    w_ref : (3, W*Cin, W*Cout)   per-ky expanded conv weight (rank-summed, kx folded
                                 into a lane shift, BN scale folded in)
    b_ref : (H, W*Cout)          border-aware bias map (pw bias through dw taps +
                                 dw bias, all BN-scaled) + BN shift
    o_ref : (1, H, W*Cout)       output, lane order (w, c)
    """
    x = x_ref[0]                                             # (H, W*Cin)
    zero_row = jnp.zeros((1, x.shape[1]), x.dtype)

    # vertical taps: output row h reads input rows h-1, h, h+1 (zero padded)
    x_up = jnp.concatenate([zero_row, x[:-1]], axis=0)       # row h -> x[h-1]
    x_dn = jnp.concatenate([x[1:], zero_row], axis=0)        # row h -> x[h+1]

    # 3 MXU matmuls cover: pointwise conv, all ranks, all horizontal taps,
    # and the lane expansion to (w, c) order — all at once.
    acc = jnp.dot(x_up, w_ref[0], preferred_element_type=jnp.float32)
    acc = acc + jnp.dot(x, w_ref[1], preferred_element_type=jnp.float32)
    acc = acc + jnp.dot(x_dn, w_ref[2], preferred_element_type=jnp.float32)

    # folded bias map + ReLU
    o_ref[0] = jnp.maximum(acc + b_ref[...], 0.0).astype(o_ref.dtype)


def falcon_rank_forward(x_nchw, params, *, stride=1, eps=1e-5):
    """Pallas-backed forward pass of FALCONRank. Input/output layout: NCHW."""
    # TODO(synk): stride > 1 depthwise subsampling not implemented in the kernel.
    assert stride == 1, "only stride=1 supported"
    # TODO(synk): optional bf16 HBM/MXU path (v6e/v7x) not enabled; kept f32 for tight tolerance.

    x = jnp.transpose(x_nchw, (0, 2, 3, 1)).astype(jnp.float32)     # NCHW -> NHWC
    N, H, W, Cin = x.shape
    rank, _, Cout = params["w_pw"].shape
    WCin = W * Cin
    WC = W * Cout

    # lane-dense input slab: last dim = W*Cin, lane order (w, i)
    x_lane = x.reshape(N, H, WCin)

    w_pw = params["w_pw"].astype(jnp.float32)                       # (rank, Cin, Cout)
    b_pw = params["b_pw"].astype(jnp.float32)                       # (rank, Cout)
    w_dw = params["w_dw"].astype(jnp.float32)                       # (rank, 3, 3, Cout)
    b_dw = params["b_dw"].astype(jnp.float32)                       # (rank, Cout)

    scale = (params["gamma"] / jnp.sqrt(params["var"] + eps)).astype(jnp.float32)   # (Cout,)
    shift = (params["beta"] - params["mean"] * scale).astype(jnp.float32)           # (Cout,)

    # Rank-summed combined 3x3 conv weight, BN scale folded in:
    #   Wc[ky,kx,i,c] = scale[c] * sum_r pw[r,i,c] * dw[r,ky,kx,c]
    wc = jnp.einsum('ric,rklc->klic', w_pw, w_dw) * scale[None, None, None, :]      # (3,3,Cin,Cout)

    # Horizontal tap kx encoded as a lane (w) shift inside the weight:
    #   S_kx[w', w] = 1 iff w' == w + kx - 1
    s_all = jnp.stack([jnp.eye(W, dtype=jnp.float32, k=1 - kx) for kx in range(3)]) # (3,W,W)

    # Expanded per-ky weight: input lane (w'*Cin+i) -> output lane (w*Cout+c)
    w_exp = jnp.einsum('xvw,kxic->kviwc', s_all, wc).reshape(3, WCin, WC)           # (3,W*Cin,W*Cout)

    # Border-aware bias map: the pointwise bias enters through the zero-padded
    # depthwise window, so its effective weight varies near the image border.
    db = jnp.einsum('rklc,rc->klc', w_dw, b_pw)                                     # (3,3,Cout)
    hh = jnp.arange(H)[:, None] + jnp.arange(3)[None, :] - 1
    ww = jnp.arange(W)[:, None] + jnp.arange(3)[None, :] - 1
    inb_h = ((hh >= 0) & (hh < H)).astype(jnp.float32)                              # (H,3)
    inb_w = ((ww >= 0) & (ww < W)).astype(jnp.float32)                              # (W,3)
    bmap = jnp.einsum('hk,wl,klc->hwc', inb_h, inb_w, db) + b_dw.sum(axis=0)[None, None, :]
    bias_lane = (bmap * scale[None, None, :] + shift[None, None, :]).reshape(H, WC) # (H, W*Cout)

    out_lane = pl.pallas_call(
        _falcon_rank_kernel,
        out_shape=jax.ShapeDtypeStruct((N, H, WC), jnp.float32),
        grid_spec=pltpu.PrefetchScalarGridSpec(
            num_scalar_prefetch=0,
            grid=(N,),
            in_specs=[
                pl.BlockSpec((1, H, WCin), lambda n: (n, 0, 0)),      # x (lane-dense per image)
                pl.BlockSpec((3, WCin, WC), lambda n: (0, 0, 0)),     # expanded per-ky weight
                pl.BlockSpec((H, WC), lambda n: (0, 0)),              # border-aware bias map
            ],
            out_specs=pl.BlockSpec((1, H, WC), lambda n: (n, 0, 0)),  # lane-dense output
        ),
        compiler_params=pltpu.CompilerParams(dimension_semantics=("parallel",)),
    )(x_lane, w_exp, bias_lane)

    out_nhwc = out_lane.reshape(N, H, W, Cout)
    return jnp.transpose(out_nhwc, (0, 3, 1, 2))                    # NHWC -> NCHW


def init_params(key, in_planes, out_planes, rank):
    """Deterministic synthetic parameters (shapes match the PyTorch module)."""
    ks = jax.random.split(key, 6)
    return {
        "w_pw": 0.1 * jax.random.normal(ks[0], (rank, in_planes, out_planes), jnp.float32),
        "b_pw": 0.1 * jax.random.normal(ks[1], (rank, out_planes), jnp.float32),
        "w_dw": 0.1 * jax.random.normal(ks[2], (rank, 3, 3, out_planes), jnp.float32),
        "b_dw": 0.1 * jax.random.normal(ks[3], (rank, out_planes), jnp.float32),
        # BatchNorm2d params (eval-mode running statistics + affine)
        "gamma": 1.0 + 0.1 * jax.random.normal(ks[4], (out_planes,), jnp.float32),
        "beta": 0.1 * jax.random.normal(ks[5], (out_planes,), jnp.float32),
        "mean": jnp.zeros((out_planes,), jnp.float32),
        "var": jnp.ones((out_planes,), jnp.float32),
    }


def reference_forward(x_nchw, params, *, stride=1, eps=1e-5):
    """Pure-JAX (lax.conv) reference, NCHW, for correctness checking."""
    rank = params["w_pw"].shape[0]
    cout = params["w_pw"].shape[2]
    acc = None
    for r in range(rank):
        w_pw_oihw = jnp.transpose(params["w_pw"][r], (1, 0))[:, :, None, None]
        pw = lax.conv_general_dilated(x_nchw, w_pw_oihw, (1, 1), "VALID",
                                      dimension_numbers=("NCHW", "OIHW", "NCHW"))
        pw = pw + params["b_pw"][r][None, :, None, None]
        w_dw_oihw = jnp.transpose(params["w_dw"][r], (2, 0, 1))[:, None, :, :]
        dw = lax.conv_general_dilated(pw, w_dw_oihw, (stride, stride),
                                      ((1, 1), (1, 1)),
                                      dimension_numbers=("NCHW", "OIHW", "NCHW"),
                                      feature_group_count=cout)
        dw = dw + params["b_dw"][r][None, :, None, None]
        acc = dw if acc is None else acc + dw
    scale = params["gamma"] / jnp.sqrt(params["var"] + eps)
    shift = params["beta"] - params["mean"] * scale
    out = acc * scale[None, :, None, None] + shift[None, :, None, None]
    return jnp.maximum(out, 0.0)


if __name__ == "__main__":
    # small shapes consistent with the module: N=2, in_planes=4, H=W=16
    N, in_planes, out_planes, H, W = 2, 4, 8, 16, 16
    rank, stride = 2, 1

    key = jax.random.PRNGKey(0)
    k_x, k_p = jax.random.split(key)
    x = jax.random.normal(k_x, (N, in_planes, H, W), jnp.float32)   # NCHW like PyTorch
    params = init_params(k_p, in_planes, out_planes, rank)

    out = falcon_rank_forward(x, params, stride=stride)
    out = jax.block_until_ready(out)

    ref = jax.block_until_ready(reference_forward(x, params, stride=stride))
    assert out.shape == (N, out_planes, H, W), out.shape
    assert jnp.allclose(out, ref, atol=1e-4, rtol=1e-4), float(jnp.max(jnp.abs(out - ref)))

    print("KERNEL_OK")
</pallas_src>

<mosaic_0001>
module attributes {stable_mosaic.version = 11 : i64} {
  func.func @_falcon_rank_kernel(%arg0: i32, %arg1: memref<1x16x64xf32, #tpu.memory_space<vmem>>, %arg2: memref<3x64x128xf32, #tpu.memory_space<vmem>>, %arg3: memref<16x128xf32, #tpu.memory_space<vmem>>, %arg4: memref<1x16x128xf32, #tpu.memory_space<vmem>>) attributes {dimension_semantics = [#tpu.dimension_semantics<parallel>], iteration_bounds = array<i64: 2>, scalar_prefetch = 0 : i64, scratch_operands = 0 : i64, tpu.core_type = #tpu.core_type<tc>, window_params = [{transform_indices = @transform_0, window_bounds = array<i64: 1, 16, 64>}, {pipeline_mode = #tpu.pipeline_mode<synchronous>, transform_indices = @transform_1, window_bounds = array<i64: 3, 64, 128>}, {pipeline_mode = #tpu.pipeline_mode<synchronous>, transform_indices = @transform_2, window_bounds = array<i64: 16, 128>}, {transform_indices = @transform_3, window_bounds = array<i64: 1, 16, 128>}]} {
    %c0 = arith.constant 0 : index
    %c0_0 = arith.constant 0 : index
    %c0_1 = arith.constant 0 : index
    %0 = vector.load %arg1[%c0, %c0_0, %c0_1] : memref<1x16x64xf32, #tpu.memory_space<vmem>>, vector<1x16x64xf32>
    %1 = vector.shape_cast %0 : vector<1x16x64xf32> to vector<16x64xf32>
    %cst = arith.constant 0.000000e+00 : f32
    %2 = vector.broadcast %cst : f32 to vector<1x64xf32>
    %3 = vector.extract_strided_slice %1 {offsets = [0, 0], sizes = [15, 64], strides = [1, 1]} : vector<16x64xf32> to vector<15x64xf32>
    %4 = tpu.concatenate %2, %3 in 0 : vector<1x64xf32>, vector<15x64xf32> -> vector<16x64xf32>
    %5 = vector.extract_strided_slice %1 {offsets = [1, 0], sizes = [15, 64], strides = [1, 1]} : vector<16x64xf32> to vector<15x64xf32>
    %6 = tpu.concatenate %5, %2 in 0 : vector<15x64xf32>, vector<1x64xf32> -> vector<16x64xf32>
    %c0_2 = arith.constant 0 : index
    %c0_3 = arith.constant 0 : index
    %c0_4 = arith.constant 0 : index
    %7 = vector.load %arg2[%c0_2, %c0_3, %c0_4] : memref<3x64x128xf32, #tpu.memory_space<vmem>>, vector<1x64x128xf32>
    %8 = vector.shape_cast %7 : vector<1x64x128xf32> to vector<64x128xf32>
    %cst_5 = arith.constant dense<0.000000e+00> : vector<16x128xf32>
    %9 = tpu.matmul %4, %8, %cst_5 {dimension_numbers = #tpu.dot_dimension_numbers<[1], [0], [0], [1], [0, 0, 1, 1], [], []>} : vector<16x64xf32>, vector<64x128xf32>, vector<16x128xf32> -> vector<16x128xf32>
    %c1 = arith.constant 1 : index
    %c0_6 = arith.constant 0 : index
    %c0_7 = arith.constant 0 : index
    %10 = vector.load %arg2[%c1, %c0_6, %c0_7] : memref<3x64x128xf32, #tpu.memory_space<vmem>>, vector<1x64x128xf32>
    %11 = vector.shape_cast %10 : vector<1x64x128xf32> to vector<64x128xf32>
    %cst_8 = arith.constant dense<0.000000e+00> : vector<16x128xf32>
    %12 = tpu.matmul %1, %11, %cst_8 {dimension_numbers = #tpu.dot_dimension_numbers<[1], [0], [0], [1], [0, 0, 1, 1], [], []>} : vector<16x64xf32>, vector<64x128xf32>, vector<16x128xf32> -> vector<16x128xf32>
    %13 = arith.addf %9, %12 : vector<16x128xf32>
    %c2 = arith.constant 2 : index
    %c0_9 = arith.constant 0 : index
    %c0_10 = arith.constant 0 : index
    %14 = vector.load %arg2[%c2, %c0_9, %c0_10] : memref<3x64x128xf32, #tpu.memory_space<vmem>>, vector<1x64x128xf32>
    %15 = vector.shape_cast %14 : vector<1x64x128xf32> to vector<64x128xf32>
    %cst_11 = arith.constant dense<0.000000e+00> : vector<16x128xf32>
    %16 = tpu.matmul %6, %15, %cst_11 {dimension_numbers = #tpu.dot_dimension_numbers<[1], [0], [0], [1], [0, 0, 1, 1], [], []>} : vector<16x64xf32>, vector<64x128xf32>, vector<16x128xf32> -> vector<16x128xf32>
    %17 = arith.addf %13, %16 : vector<16x128xf32>
    %c0_12 = arith.constant 0 : index
    %c0_13 = arith.constant 0 : index
    %18 = vector.load %arg3[%c0_12, %c0_13] : memref<16x128xf32, #tpu.memory_space<vmem>>, vector<16x128xf32>
    %19 = arith.addf %17, %18 : vector<16x128xf32>
    %cst_14 = arith.constant 0.000000e+00 : f32
    %20 = vector.broadcast %cst_14 : f32 to vector<16x128xf32>
    %21 = arith.maximumf %19, %20 : vector<16x128xf32>
    %c0_15 = arith.constant 0 : index
    %c0_16 = arith.constant 0 : index
    %c0_17 = arith.constant 0 : index
    %22 = vector.load %arg4[%c0_15, %c0_16, %c0_17] : memref<1x16x128xf32, #tpu.memory_space<vmem>>, vector<1x16x128xf32>
    %23 = vector.shape_cast %22 : vector<1x16x128xf32> to vector<16x128xf32>
    %24 = vector.shape_cast %21 : vector<16x128xf32> to vector<1x16x128xf32>
    tpu.vector_store %arg4[%c0_15, %c0_16, %c0_17], %24 {strides = array<i32>} : memref<1x16x128xf32, #tpu.memory_space<vmem>>, vector<1x16x128xf32>,
    return
  }
  func.func @transform_0(%arg0: i32) -> (i32, i32, i32) {
    %c0_i32 = arith.constant 0 : i32
    %c0_i32_0 = arith.constant 0 : i32
    %c0_i32_1 = arith.constant 0 : i32
    return %arg0, %c0_i32, %c0_i32_0 : i32, i32, i32
  }
  func.func @transform_1(%arg0: i32) -> (i32, i32, i32) {
    %c0_i32 = arith.constant 0 : i32
    %c0_i32_0 = arith.constant 0 : i32
    %c0_i32_1 = arith.constant 0 : i32
    %c0_i32_2 = arith.constant 0 : i32
    return %c0_i32, %c0_i32_0, %c0_i32_1 : i32, i32, i32
  }
  func.func @transform_2(%arg0: i32) -> (i32, i32) {
    %c0_i32 = arith.constant 0 : i32
    %c0_i32_0 = arith.constant 0 : i32
    %c0_i32_1 = arith.constant 0 : i32
    return %c0_i32, %c0_i32_0 : i32, i32
  }
  func.func @transform_3(%arg0: i32) -> (i32, i32, i32) {
    %c0_i32 = arith.constant 0 : i32
    %c0_i32_0 = arith.constant 0 : i32
    %c0_i32_1 = arith.constant 0 : i32
    return %arg0, %c0_i32, %c0_i32_0 : i32, i32, i32
  }
}

</mosaic_0001>

<bundles_post_ra>
// kernel: tpu_custom_call.1
= control target key start
LH: loop header
LB: loop body
LE: loop exit
PB: predicated region body
PF: predicated region fallthrough
CT: control target
= control target key end

     0   :  { %8 = vsyncpa [#allocation3], 0  ;;  %s929_s0 = inlined_call_operand.hbm [shape: f32[2,16,64], index: 0, kind: input, shape index: {}]   ;;  %s930_s1 = inlined_call_operand.hbm [shape: f32[3,64,128], index: 1, kind: input, shape index: {}]   ;;  %s931_s2 = inlined_call_operand.hbm [shape: f32[16,128], index: 2, kind: input, shape index: {}]   ;;  %s932_s3 = inlined_call_operand.hbm [shape: f32[2,16,128], index: 3, kind: output, shape index: {}]  }
   0x1   :  { %10 = vsyncpa [#allocation3 + $0x1], 0 }
   0x2   :  { %11 = vsyncpa [#allocation6], 0 }
   0x3   :  { %12 = vsyncpa [#allocation4], 0 }
   0x4   :  { %14 = vsyncpa [#allocation4 + $0x1], 0  ;;  %s761_s12 = smov 0   ;;  %s763_s13 = smov 0  }
   0x5   :  { %s765_s14 = smov 0   ;;  %s767_s15 = smov 0  }
   0x6 LB: > { %s782_s16 = sadd.s32 4294967295, %s733_s15   ;;  %s468_s17 = sadd.s32 4294967294, %s733_s15   ;;  %s733_s15 = sphi %s767_s15, %s942_s15   ;;  %s729_s14 = sphi %s765_s14, %s941_s14   ;;  %s725_s13 = sphi %s763_s13, %s940_s13   ;;  %s721_s12 = sphi %s761_s12, %s939_s12  }
   0x7   : > { %p40_p0 = scmp.ne.s32.totalorder %s725_s13, %s721_s12  ;;  %p41_p1 = scmp.eq.s32.totalorder %s782_s16, 0 }
   0x8   : > { %p106_p2 = scmp.eq.s32.totalorder %s782_s16, 1  ;;  %p112_p3 = scmp.eq.s32.totalorder %s468_s17, 1 }
   0x9   : > { %p791_p4 = por %p41_p1, %p40_p0  ;;  %p469_p5 = scmp.ge.s32.totalorder %s733_s15, 1 }
   0xa   : > { %p796_p6 = por %p112_p3, %p40_p0  ;;  %p119_p7 = scmp.lt.s32.totalorder %s733_s15, 3 }
   0xb   : > { %s130_s22 = sshll.u32 %s930_s1, 4  ;;  %s735_s24 = smov [#allocation5]   ;;  %s131_s22 = int_to_ptr.hbm [resolvable:$true] %s130_s22 }
   0xc   : > { %p804_p8 = pnand %p469_p5, %p119_p7  ;;  %s132_s25 = sshll.u32 %s735_s24, 4  ;;  %s133_s25 = int_to_ptr.vmem [resolvable:$true] %s132_s25 }
   0xd   : > { %s144_s28 = sshll.u32 %s931_s2, 4  ;;  %s736_s29 = smov 128   ;;  %s145_s28 = int_to_ptr.hbm [resolvable:$true] %s144_s28 }
   0xe   : > { %p514_p9 = pneg %p804_p8  ;;  %s737_s30 = smov 8  }
   0xf   : > { %s738_s4 = smov [#allocation7]   ;;  %s823_s6 = sadd.s32 1, %s733_s15  }
  0x10   : > { %p515_p10 = pnand %p514_p9, %p41_p1  ;;  %s146_s5 = sshll.u32 %s738_s4, 4  ;;  %s147_s5 = int_to_ptr.vmem [resolvable:$true] %s146_s5 }
  0x11   : > { %s27_s7 = sadd.s32 1, %s729_s14  ;;  %s24_s8 = ssub.s32 %s733_s15, %s823_s6 }
  0x12   : > { %517 = dma.hbm_to_vmem [thread:$0]  (!%p515_p10), %s131_s22, 3072, %s133_s25, [#allocation6], %s736_s29, %s736_s29, %s737_s30  }
  0x13   : > { %520 = dma.hbm_to_vmem [thread:$0]  (!%p515_p10), %s145_s28, 256, %s147_s5, [#allocation6], %s736_s29, %s736_s29, %s737_s30  }
  0x14   : > { %p34_p12 = scmp.ne.s32.totalorder %s729_s14, %s725_s13  ;;  %p25_p13 = scmp.eq.s32.totalorder %s24_s8, 0 }
  0x15   : > { %p35_p0 = scmp.eq.s32.totalorder %s733_s15, 0  ;;  %p531_p5 = scmp.lt.s32.totalorder %s733_s15, 2 }
  0x16   : > { %p833_p3 = por %p106_p2, %p34_p12  ;;  %s160_s11 = sand.u32 1, %s729_s14  }
  0x17   : > { %s839_s10 = scalar_select %p25_p13, %s729_s14, %s27_s7  }
  0x18   : > { %p36_p7 = por %p35_p0, %p34_p12  ;;  %s473_s17 = sshll.u32 %s160_s11, 4 }
  0x19   : > { %s492_s20 = sshll.u32 %s733_s15, 4  ;;  %s164_s25 = scalar_lea.vmem [#allocation2], %s473_s17 }
  0x1a   : > { %s169_s24 = scalar_lea.hbm %s929_s0, %s492_s20  ;;  %s172_s26 = sshll.u32 %s164_s25, 4  ;;  %s173_s26 = int_to_ptr.vmem [resolvable:$true] %s172_s26 }
  0x1b   : > { %s170_s27 = sshll.u32 %s169_s24, 4  ;;  %p846_p2 = pnand %p531_p5, %p36_p7  ;;  %s171_s27 = int_to_ptr.hbm [resolvable:$true] %s170_s27 }
  0x1c   : > { %s161_s4 = scalar_lea.sflag [#allocation3], %s160_s11  ;;  %s633_s5 = sshra.s32 %s171_s27, 4  ;;  %s634_s5 = int_to_ptr.hbm [resolvable:$true] %s633_s5 }
  0x1d   : > { %s635_s7 = scalar_lea.hbm %s634_s5, 16  ;;  %p637_p10 = pneg %p846_p2 }
  0x1e   : > { %p636_p9 = scmp.ne.s32.totalorder %s634_s5, %s635_s7  ;;  %s640_s20 = scalar_lea.hbm %s929_s0, 32 }
  0x1f   : > { %p641_p0 = scmp.lt.s32.totalorder %s634_s5, %s929_s0  ;;  %p642_p5 = scmp.lt.s32.totalorder %s640_s20, %s635_s7 }
  0x20   : > { %p638_p12 = pnand %p637_p10, %p636_p9 }
  0x21   : > { %p643_p7 = por %p642_p5, %p641_p0 }
  0x22   : > { %p639_p13 = pneg %p638_p12 }
  0x24   : > { %p644_p11 = pnand %p643_p7, %p639_p13 }
  0x26   : > { %647 = shalt.err (!%p644_p11)
}
  0x27   : > { %524 = dma.hbm_to_vmem [thread:$0]  (!%p846_p2), %s171_s27, 256, %s173_s26, %s161_s4, %s736_s29, %s736_s29, %s737_s30  }
  0x28   : > { %184 = sbr.rel (%p804_p8) target bundleno = 214 (0xd6), region = 32  ;;  %s866_s11 = sand.u32 (!%p804_p8), 1, %s725_s13  }
  0x29   : > { %s477_s24 = sshll.u32 (!%p804_p8), %s866_s11, 4  ;;  %s187_s25 = scalar_lea.sflag (!%p804_p8), [#allocation3], %s866_s11 }
  0x2a   : > { %s872_s5 = scalar_lea.vmem (!%p804_p8), [#allocation2], %s477_s24 }
  0x2d   : > { %708 = dma.done.wait (%p791_p4), %s187_s25, 256  }
  0x2e   : > { %710 = vsyncadd (%p791_p4), %s187_s25, 4294967040 }
  0x2f   : > { %712 = dma.done.wait (%p41_p1), [#allocation6], 3328  }
  0x30   : > { %714 = vsyncadd (%p41_p1), [#allocation6], 4294963968  ;;  %v321_v0 = vld [vmem:[#allocation5 + $0xb8] sm:$0xff]  ;;  %v320_v1 = vld [vmem:[#allocation5 + $0xb0] sm:$0xff]  ;;  %vm234_vm0 = vcmask 1046528   ;;  %vm228_vm1 = vcmask 1040384  }
  0x31   : > { %v256_v2 = vld [vmem:[#allocation5 + $0x78] sm:$0xff]  ;;  %335 = vmatpush.msra.mxu2 %v321_v0  ;;  %v255_v4 = vld [vmem:[#allocation5 + $0x70] sm:$0xff]  ;;  %v319_v5 = vld [vmem:[#allocation5 + $0xa8] sm:$0xff]  ;;  %vm257_vm2 = vcmask 523264   ;;  %s493_s18 = sshll.u32 %s782_s16, 4  ;;  %s223_s26 = scalar_lea.vmem [#allocation8], %s477_s24 }
  0x32   : > { %270 = vmatpush.msra.mxu0 %v256_v2  ;;  %v247_v3 = vld [vmem:[#allocation5 + $0x38] sm:$0xff]  ;;  %494 = vmatpush.msra.mxu3 %v256_v2  ;;  %v246_v6 = vld [vmem:[#allocation5 + $0x30] sm:$0xff]  ;;  %v254_v7 = vld [vmem:[#allocation5 + $0x68] sm:$0xff]  ;;  %s372_s30 = scalar_lea.hbm %s932_s3, %s493_s18  ;;  %s373_s27 = sshll.u32 %s223_s26, 4  ;;  %s374_s27 = int_to_ptr.vmem [resolvable:$true] %s373_s27 }
  0x33   : > { %298 = vmatpush.msra.mxu1 %v247_v3  ;;  %336 = vmatpush.msra.mxu2 %v320_v1  ;;  %v245_v8 = vld [vmem:[#allocation5 + $0x28] sm:$0xff]  ;;  %v318_v9 = vld [vmem:[#allocation5 + $0xa0] sm:$0xff]  ;;  %v317_v12 = vld [vmem:[#allocation5 + $0x98] sm:$0xff]  ;;  %s375_s28 = sshll.u32 %s372_s30, 4  ;;  %s361_s16 = scalar_lea.sflag [#allocation4], %s866_s11  ;;  %s376_s28 = int_to_ptr.hbm [resolvable:$true] %s375_s28 }
  0x34   : > { %271 = vmatpush.msra.mxu0 %v255_v4  ;;  %495 = vmatpush.msra.mxu3 %v255_v4  ;;  %v253_v10 = vld [vmem:[#allocation5 + $0x60] sm:$0xff]  ;;  %v252_v13 = vld [vmem:[#allocation5 + $0x58] sm:$0xff]  ;;  %v316_v17 = vld [vmem:[#allocation5 + $0x90] sm:$0xff]  ;;  %s677_s4 = sshra.s32 %s376_s28, 4  ;;  %s683_s20 = scalar_lea.hbm %s932_s3, 32  ;;  %s678_s4 = int_to_ptr.hbm [resolvable:$true] %s677_s4 }
  0x35   : > { %299 = vmatpush.msra.mxu1 %v246_v6  ;;  %337 = vmatpush.msra.mxu2 %v319_v5  ;;  %v244_v11 = vld [vmem:[#allocation5 + $0x20] sm:$0xff]  ;;  %v243_v15 = vld [vmem:[#allocation5 + $0x18] sm:$0xff]  ;;  %v251_v18 = vld [vmem:[#allocation5 + $0x50] sm:$0xff]  ;;  %s679_s7 = scalar_lea.hbm %s678_s4, 16  ;;  %p684_p11 = scmp.lt.s32.totalorder %s678_s4, %s932_s3 }
  0x36   : > { %272 = vmatpush.msra.mxu0 %v254_v7  ;;  %496 = vmatpush.msra.mxu3 %v254_v7  ;;  %v224_v14 = vld [vmem:[%s872_s5] sm:$0xff]  ;;  %v225_v16 = vld [vmem:[%s872_s5 + $0x8] sm:$0xff]  ;;  %p680_p1 = scmp.ne.s32.totalorder %s678_s4, %s679_s7  ;;  %p685_p2 = scmp.lt.s32.totalorder %s683_s20, %s679_s7 }
  0x37   : > { %300 = vmatpush.msra.mxu1 %v245_v8  ;;  %338 = vmatpush.msra.mxu2 %v318_v9  ;;  %v242_v19 = vld [vmem:[#allocation5 + $0x10] sm:$0xff]  ;;  %v235_v20 = vrot.slane %v224_v14, 1  ;;  %v236_v21 = vrot.slane %v225_v16, 1  ;;  %v315_v22 = vld [vmem:[#allocation5 + $0x88] sm:$0xff]  ;;  %v229_v24 = vrot.slane %v224_v14, 7  ;;  %v314_v26 = vld [vmem:[#allocation5 + $0x80] sm:$0xff] }
  0x38   : > { %273 = vmatpush.msra.mxu0 %v253_v10  ;;  %497 = vmatpush.msra.mxu3 %v253_v10  ;;  %v250_v23 = vld [vmem:[#allocation5 + $0x48] sm:$0xff]  ;;  %v249_v27 = vld [vmem:[#allocation5 + $0x40] sm:$0xff]  ;;  %v230_v31 = vrot.slane %v225_v16, 7  ;;  %p681_p4 = pnand %p680_p1, %p833_p3  ;;  %p686_p9 = por %p685_p2, %p684_p11 }
  0x39   : > { %301 = vmatpush.msra.mxu1 %v244_v11  ;;  %339 = vmatpush.msra.mxu2 %v317_v12  ;;  %v241_v25 = vld [vmem:[#allocation5 + $0x8] sm:$0xff]  ;;  %v237_v28 = vsel %vm234_vm0, %v235_v20, %v236_v21  ;;  %v240_v29 = vld [vmem:[#allocation5] sm:$0xff]  ;;  %v233_v30 = vsel %vm228_vm1, 0.0, %v229_v24  ;;  %v239_v32 = vsel %vm234_vm0, %v236_v21, 0.0 }
  0x3a   : > { %274 = vmatpush.msra.mxu0 %v252_v13  ;;  %498 = vmatpush.msra.mxu3 %v252_v13  ;;  %v231_v33 = vsel %vm228_vm1, %v229_v24, %v230_v31  ;;  %v352_v38 = vld [vmem:[#allocation7] sm:$0xff]  ;;  %v353_v46 = vld [vmem:[#allocation7 + $0x8] sm:$0xff]  ;;  %p682_p8 = pneg %p681_p4 }
  0x3b   : > { %302 = vmatpush.msra.mxu1 %v243_v15  ;;  %340 = vmatpush.msra.mxu2 %v316_v17 }
  0x3c   : > { %275 = vmatpush.msra.mxu0 %v251_v18  ;;  %499 = vmatpush.msra.mxu3 %v251_v18  ;;  %p687_p10 = pnand %p686_p9, %p682_p8 }
  0x3d   : > { %303 = vmatpush.msra.mxu1 %v242_v19  ;;  %341 = vmatpush.msra.mxu2 %v315_v22 }
  0x3e   : > { %276 = vmatpush.msra.mxu0 %v250_v23  ;;  %500 = vmatpush.msra.mxu3 %v250_v23 }
  0x3f   : > { %304 = vmatpush.msra.mxu1 %v241_v25  ;;  %342 = vmatpush.msra.mxu2 %v314_v26 }
  0x40   : > { %277 = vmatpush.msra.mxu0 %v249_v27  ;;  %485 = vmatmul.msk.f32.vlgmr.msra.gmra.mxu2 %vm257_vm2, %v237_v28 }
  0x41   : > { %305 = vmatpush.msra.mxu1 %v240_v29  ;;  %481 = vmatmul.msk.f32.vlgmr.msra.gmra.mxu0 %vm257_vm2, %v224_v14 }
  0x42   : > { %483 = vmatmul.msk.f32.vlgmr.msra.gmra.mxu1 %vm257_vm2, %v233_v30  ;;  %501 = vmatpush.msra.mxu3 %v249_v27 }
  0x43   : > { %482 = vmatmul.msk.f32.vlgmr.msra.gmra.mxu3 %vm257_vm2, %v225_v16 }
  0x48   : > { %486 = vmatmul.msk.f32.gmra.mxu2 %vm257_vm2, %v239_v32 }
  0x4a   : > { %484 = vmatmul.msk.f32.gmra.mxu1 %vm257_vm2, %v231_v33 }
  0xbe   : > { %v279_v34 = vpop.f32.mrf.mxu0 }
  0xbf   : > { %v307_v35 = vpop.f32.mrf.mxu1 }
  0xc0   : > { %v308_v36 = vadd.f32 %v307_v35, %v279_v34 }
  0xc3   : > { %v344_v37 = vpop.f32.mrf.mxu2 }
  0xc4   : > { %v350_v39 = vadd.f32 %v344_v37, %v308_v36 }
  0xc6   : > { %v354_v40 = vadd.f32 %v352_v38, %v350_v39  ;;  %v282_v41 = vpop.f32.mrf.mxu3 }
  0xc7   : > { %v310_v42 = vpop.f32.mrf.mxu1 }
  0xc8   : > { %v356_v43 = vmax.f32 %v354_v40, 0.0  ;;  %v311_v44 = vadd.f32 %v310_v42, %v282_v41 }
  0xca   : > { %358 = vst [vmem:[%s223_s26] sm:$0xff] %v356_v43 }
  0xcb   : > { %v347_v45 = vpop.f32.mrf.mxu2 }
  0xcc   : > { %v351_v47 = vadd.f32 %v347_v45, %v311_v44 }
  0xce   : > { %v355_v48 = vadd.f32 %v353_v46, %v351_v47 }
  0xd0   : > { %v357_v49 = vmax.f32 %v355_v48, 0.0 }
  0xd2   : > { %359 = vst [vmem:[%s223_s26 + $0x8] sm:$0xff] %v357_v49 }
  0xd3   : > { %690 = shalt.err (!%p687_p10)
}
  0xd4   : > { %s739_s11 = smov 128   ;;  %s740_s24 = smov 8  }
  0xd5   : > { %512 = dma.vmem_to_hbm [thread:$0]  (%p833_p3), %s374_s27, 256, %s376_s28, %s361_s16, %s739_s11, %s739_s11, %s740_s24  }
  0xd6 PF: > { %s390_s25 = sand.u32 1, %s721_s12   ;;  %p938_p12 = scmp.ge.s32.totalorder %s733_s15, 2 }
  0xd7   : > { %s391_s5 = scalar_lea.sflag [#allocation4], %s390_s25 }
  0xd8   : > { %p526_p13 = pnand %p938_p12, %p796_p6 }
  0xda   : > { %p527_p0 = pneg %p526_p13 }
  0xdc   : > { %716 = dma.done.wait (%p527_p0), %s391_s5, 256  }
  0xdd   : > { %718 = vsyncadd (%p527_p0), %s391_s5, 4294967040  ;;  %p17_p5 = scmp.ge.s32.totalorder %s823_s6, 4   ;;  %s939_s12 = smov %s725_s13 }
  0xde   : > { %s940_s13 = smov %s729_s14  ;;  %s941_s14 = smov %s839_s10 }
  0xdf   : > { %s942_s15 = smov %s823_s6  ;;  %19 = sbr.rel (!%p17_p5) target bundleno = 6 (0x6), region = 87 }
  0xe4   :  { %397 = vsyncpa [#allocation3], 1 }
  0xe5   :  { %399 = vsyncpa [#allocation3 + $0x1], 1 }
  0xe6   :  { %400 = vsyncpa [#allocation6], 1 }
  0xe7   :  { %401 = vsyncpa [#allocation4], 1 }
  0xe8   :  { %403 = vsyncpa [#allocation4 + $0x1], 1 }

</bundles_post_ra>
